<compile_context>
chip_gen: v7x
topology: tpu7x:2x2x1
jax: 0.10.0
libtpu: 0.0.40
codegen_flags: <defaults>
</compile_context>

<pallas_src>
import functools

import jax
import jax.numpy as jnp
from jax import lax
from jax.experimental import pallas as pl
from jax.experimental.pallas import tpu as pltpu


def _ceil128(n: int) -> int:
    return ((n + 127) // 128) * 128


def _pad_lanes(x, width):
    """Zero-pad the last (lane) dim of a 2-D block up to `width`."""
    pad = width - x.shape[-1]
    if pad == 0:
        return x
    return jnp.concatenate([x, jnp.zeros((x.shape[0], pad), x.dtype)], axis=-1)


def _ac_lstm_kernel(obs_ref, h0_ref, c0_ref,
                    wx_ref, whh_ref, b_ref,
                    wsh_ref, bsh_ref, whd_ref, bhd_ref,
                    out_ref, xg_scr, h_scr, c_scr,
                    *, T, Tc, Bp, H, hid_w, unroll):
    t_chunk = pl.program_id(0)
    n_chunks = pl.num_programs(0)

    # Initialize the persistent recurrent state on the first chunk.
    @pl.when(t_chunk == 0)
    def _():
        h_scr[...] = h0_ref[...]
        c_scr[...] = c0_ref[...]

    # (1) Input projection + fused LSTM bias for the whole chunk: one GEMM.
    xg_scr[...] = (jnp.dot(obs_ref[...], wx_ref[...],
                           preferred_element_type=jnp.float32) + b_ref[...])

    whh = whh_ref[...]            # (H, 4H), hoisted out of the serial loop

    # (2) Serial recurrence: h/c live in vregs; only h @ W_hh per step.
    def step(t, carry):
        h, c = carry
        row = pl.multiple_of(t * Bp, Bp)
        gates = xg_scr[pl.ds(row, Bp), :] + jnp.dot(
            h, whh, preferred_element_type=jnp.float32)        # (Bp, 4H)
        # Full-width nonlinearities (2 EUP pushes), then cheap lane slices.
        sig = jax.nn.sigmoid(gates)
        th = jnp.tanh(gates)
        i_g = sig[:, 0 * H:1 * H]          # PyTorch gate order: i, f, g, o
        f_g = sig[:, 1 * H:2 * H]
        g_g = th[:, 2 * H:3 * H]
        o_g = sig[:, 3 * H:4 * H]
        c_new = f_g * c + i_g * g_g
        h_new = o_g * jnp.tanh(c_new)
        return h_new, c_new

    if T % Tc == 0:
        # Static trip count: unroll for LLO scheduler visibility.
        h, c = lax.fori_loop(0, Tc, step, (h_scr[...], c_scr[...]),
                             unroll=unroll)
    else:
        # Last chunk may be ragged: dynamic trip count, no unroll.
        steps = jnp.minimum(Tc, T - t_chunk * Tc)
        h, c = lax.fori_loop(0, steps, step, (h_scr[...], c_scr[...]))

    h_scr[...] = h
    c_scr[...] = c

    # (3)+(4) Heads and the single lane-dense output store, last chunk only.
    @pl.when(t_chunk == n_chunks - 1)
    def _():
        shared = jnp.maximum(
            jnp.dot(h, wsh_ref[...], preferred_element_type=jnp.float32)
            + bsh_ref[...], 0.0)
        heads = (jnp.dot(shared, whd_ref[...],                 # (Bp, head_w)
                         preferred_element_type=jnp.float32) + bhd_ref[...])
        slab = jnp.concatenate(
            [heads, _pad_lanes(h, hid_w), _pad_lanes(c, hid_w)], axis=-1)
        out_ref[...] = slab                                    # one unmasked store


def actor_critic_lstm_forward(obs, params, lstm_hidden=None, time_chunk=8):
    """obs: (B, T, D) or (B, D).  Returns (logits, value, (h, c)) with
    PyTorch-compatible shapes: logits (B, A), value (B, 1), h/c (1, B, H)."""
    if obs.ndim == 2:
        obs = obs[:, None, :]
    obs = obs.astype(jnp.float32)
    B, T, D = obs.shape
    H = params["w_hh"].shape[1]
    S = params["w_shared"].shape[0]
    A = params["w_actor"].shape[0]

    if lstm_hidden is None:
        h0 = jnp.zeros((B, H), jnp.float32)
        c0 = jnp.zeros((B, H), jnp.float32)
    else:
        h0 = lstm_hidden[0].reshape(B, H).astype(jnp.float32)
        c0 = lstm_hidden[1].reshape(B, H).astype(jnp.float32)

    # Pad batch (sublane dim) to a multiple of 8 for f32.
    Bp = max(8, ((B + 7) // 8) * 8)
    if Bp != B:
        obs = jnp.pad(obs, ((0, Bp - B), (0, 0), (0, 0)))
        h0 = jnp.pad(h0, ((0, Bp - B), (0, 0)))
        c0 = jnp.pad(c0, ((0, Bp - B), (0, 0)))

    # Time chunking: each grid step streams Tc steps of obs into VMEM.
    Tc = min(T, max(1, int(time_chunk)))
    n_chunks = pl.cdiv(T, Tc)
    Tpad = n_chunks * Tc

    # Time-major + flattened: step t occupies rows [t*Bp, (t+1)*Bp).
    obs_tm = jnp.transpose(obs, (1, 0, 2))
    if Tpad != T:
        obs_tm = jnp.pad(obs_tm, ((0, Tpad - T), (0, 0), (0, 0)))
    obs_tm = obs_tm.reshape(Tpad * Bp, D)

    # Pre-transposed / fused weights (plain row-major matmuls in-kernel).
    wx = params["w_ih"].T.astype(jnp.float32)                        # (D, 4H)
    whh = params["w_hh"].T.astype(jnp.float32)                       # (H, 4H)
    b_lstm = (params["b_ih"] + params["b_hh"]).reshape(1, 4 * H).astype(jnp.float32)
    wsh = params["w_shared"].T.astype(jnp.float32)                   # (H, S)
    bsh = params["b_shared"].reshape(1, S).astype(jnp.float32)

    # Fused [actor | critic] head, zero-padded to 128 output lanes so the
    # head matmul result and the output store are lane-dense.
    head_w = _ceil128(A + 1)
    whd = jnp.concatenate([params["w_actor"].T, params["w_critic"].T],
                          axis=1).astype(jnp.float32)                # (S, A+1)
    whd = jnp.pad(whd, ((0, 0), (0, head_w - (A + 1))))              # (S, head_w)
    bhd = jnp.concatenate([params["b_actor"], params["b_critic"]]).astype(jnp.float32)
    bhd = jnp.pad(bhd, (0, head_w - (A + 1))).reshape(1, head_w)

    hid_w = _ceil128(H)
    W_out = head_w + 2 * hid_w

    kernel = functools.partial(
        _ac_lstm_kernel, T=T, Tc=Tc, Bp=Bp, H=H, hid_w=hid_w,
        unroll=min(Tc, 8))

    in_specs = [
        pl.BlockSpec((Tc * Bp, D), lambda t: (t, 0)),     # obs chunk (streamed)
        pl.BlockSpec((Bp, H), lambda t: (0, 0)),          # h0
        pl.BlockSpec((Bp, H), lambda t: (0, 0)),          # c0
        pl.BlockSpec((D, 4 * H), lambda t: (0, 0)),       # wx
        pl.BlockSpec((H, 4 * H), lambda t: (0, 0)),       # whh
        pl.BlockSpec((1, 4 * H), lambda t: (0, 0)),       # b_lstm
        pl.BlockSpec((H, S), lambda t: (0, 0)),           # wsh
        pl.BlockSpec((1, S), lambda t: (0, 0)),           # bsh
        pl.BlockSpec((S, head_w), lambda t: (0, 0)),      # whd (padded)
        pl.BlockSpec((1, head_w), lambda t: (0, 0)),      # bhd (padded)
    ]
    out_spec = pl.BlockSpec((Bp, W_out), lambda t: (0, 0))

    # VMEM budget estimate (obs double-buffered, xg scratch, weights, out).
    vmem_bytes = 4 * (2 * Tc * Bp * D + Tc * Bp * 4 * H + 4 * Bp * H
                      + D * 4 * H + H * 4 * H + 4 * H + H * S + S
                      + S * head_w + head_w + 2 * Bp * W_out)
    vmem_limit = int(min(100 * 1024 * 1024,
                         max(32 * 1024 * 1024, 2 * vmem_bytes)))

    flops = (2 * Tpad * Bp * D * 4 * H + 2 * Tpad * Bp * H * 4 * H
             + 2 * Bp * H * S + 2 * Bp * S * head_w)
    transcendentals = Tpad * Bp * 9 * H
    bytes_accessed = 4 * (Tpad * Bp * D + 2 * Bp * H + D * 4 * H + H * 4 * H
                          + 4 * H + H * S + S + S * head_w + head_w
                          + Bp * W_out)

    out = pl.pallas_call(
        kernel,
        out_shape=jax.ShapeDtypeStruct((Bp, W_out), jnp.float32),
        grid_spec=pltpu.PrefetchScalarGridSpec(
            num_scalar_prefetch=0,
            grid=(n_chunks,),
            in_specs=in_specs,
            out_specs=out_spec,
            scratch_shapes=[
                pltpu.VMEM((Tc * Bp, 4 * H), jnp.float32),   # chunk gate pre-acts
                pltpu.VMEM((Bp, H), jnp.float32),            # persistent h
                pltpu.VMEM((Bp, H), jnp.float32),            # persistent c
            ]),
        compiler_params=pltpu.CompilerParams(
            dimension_semantics=("arbitrary",),
            vmem_limit_bytes=vmem_limit),
        cost_estimate=pl.CostEstimate(
            flops=flops, transcendentals=transcendentals,
            bytes_accessed=bytes_accessed),
    )(obs_tm, h0, c0, wx, whh, b_lstm, wsh, bsh, whd, bhd)

    logits = out[:B, 0:A]
    value = out[:B, A:A + 1]
    h_n = out[:B, head_w:head_w + H]
    c_n = out[:B, head_w + hid_w:head_w + hid_w + H]
    return logits, value, (h_n[None], c_n[None])


def init_params(key, observation_dim, action_dim,
                lstm_hidden_dim=32, shared_hidden_dim=32):
    """Deterministic synthetic parameters, PyTorch-style shapes."""
    ks = jax.random.split(key, 10)
    H, D, S, A = lstm_hidden_dim, observation_dim, shared_hidden_dim, action_dim
    u = lambda k, shape, scale: jax.random.uniform(
        k, shape, jnp.float32, -scale, scale)
    s_lstm = 1.0 / jnp.sqrt(H)
    return {
        "w_ih": u(ks[0], (4 * H, D), s_lstm),
        "w_hh": u(ks[1], (4 * H, H), s_lstm),
        "b_ih": u(ks[2], (4 * H,), s_lstm),
        "b_hh": u(ks[3], (4 * H,), s_lstm),
        "w_shared": u(ks[4], (S, H), 1.0 / jnp.sqrt(H)),
        "b_shared": u(ks[5], (S,), 1.0 / jnp.sqrt(H)),
        "w_actor": u(ks[6], (A, S), 1.0 / jnp.sqrt(S)),
        "b_actor": u(ks[7], (A,), 1.0 / jnp.sqrt(S)),
        "w_critic": u(ks[8], (1, S), 1.0 / jnp.sqrt(S)),
        "b_critic": u(ks[9], (1,), 1.0 / jnp.sqrt(S)),
    }


def _reference_forward(obs, params):
    """Pure-JAX reference mirroring the PyTorch module, for validation."""
    B, T, D = obs.shape
    H = params["w_hh"].shape[1]
    h = jnp.zeros((B, H), jnp.float32)
    c = jnp.zeros((B, H), jnp.float32)
    b = params["b_ih"] + params["b_hh"]
    for t in range(T):
        g = obs[:, t, :] @ params["w_ih"].T + h @ params["w_hh"].T + b
        i_g = jax.nn.sigmoid(g[:, 0 * H:1 * H])
        f_g = jax.nn.sigmoid(g[:, 1 * H:2 * H])
        g_g = jnp.tanh(g[:, 2 * H:3 * H])
        o_g = jax.nn.sigmoid(g[:, 3 * H:4 * H])
        c = f_g * c + i_g * g_g
        h = o_g * jnp.tanh(c)
    shared = jnp.maximum(h @ params["w_shared"].T + params["b_shared"], 0.0)
    logits = shared @ params["w_actor"].T + params["b_actor"]
    value = shared @ params["w_critic"].T + params["b_critic"]
    return logits, value, (h[None], c[None])


if __name__ == "__main__":
    B, T, D = 2, 8, 16          # batch, seq len, observation_dim
    H, S, A = 32, 32, 4         # lstm_hidden_dim, shared_hidden_dim, action_dim

    key = jax.random.PRNGKey(0)
    k_obs, k_par = jax.random.split(key)
    obs = jax.random.normal(k_obs, (B, T, D), jnp.float32)
    params = init_params(k_par, D, A, lstm_hidden_dim=H, shared_hidden_dim=S)

    # time_chunk=4 -> 2 grid chunks, exercising the streamed/persistent-state path.
    logits, value, (h_n, c_n) = actor_critic_lstm_forward(
        obs, params, time_chunk=4)
    jax.block_until_ready((logits, value, h_n, c_n))

    # sanity check against pure-JAX reference
    ref_logits, ref_value, (ref_h, ref_c) = _reference_forward(obs, params)
    assert jnp.allclose(logits, ref_logits, atol=1e-4, rtol=1e-4)
    assert jnp.allclose(value, ref_value, atol=1e-4, rtol=1e-4)
    assert jnp.allclose(h_n, ref_h, atol=1e-4, rtol=1e-4)
    assert jnp.allclose(c_n, ref_c, atol=1e-4, rtol=1e-4)
    assert logits.shape == (B, A) and value.shape == (B, 1)
    assert h_n.shape == (1, B, H) and c_n.shape == (1, B, H)

    print("KERNEL_OK")
</pallas_src>

<mosaic_0001>
module attributes {stable_mosaic.version = 11 : i64} {
  func.func @_ac_lstm_kernel(%arg0: i32, %arg1: memref<32x16xf32, #tpu.memory_space<vmem>>, %arg2: memref<8x32xf32, #tpu.memory_space<vmem>>, %arg3: memref<8x32xf32, #tpu.memory_space<vmem>>, %arg4: memref<16x128xf32, #tpu.memory_space<vmem>>, %arg5: memref<32x128xf32, #tpu.memory_space<vmem>>, %arg6: memref<1x128xf32, #tpu.memory_space<vmem>>, %arg7: memref<32x32xf32, #tpu.memory_space<vmem>>, %arg8: memref<1x32xf32, #tpu.memory_space<vmem>>, %arg9: memref<32x128xf32, #tpu.memory_space<vmem>>, %arg10: memref<1x128xf32, #tpu.memory_space<vmem>>, %arg11: memref<8x384xf32, #tpu.memory_space<vmem>>, %arg12: memref<32x128xf32, #tpu.memory_space<vmem>>, %arg13: memref<8x32xf32, #tpu.memory_space<vmem>>, %arg14: memref<8x32xf32, #tpu.memory_space<vmem>>) attributes {dimension_semantics = [#tpu.dimension_semantics<arbitrary>], iteration_bounds = array<i64: 2>, scalar_prefetch = 0 : i64, scratch_operands = 3 : i64, tpu.core_type = #tpu.core_type<tc>, window_params = [{transform_indices = @transform_0, window_bounds = array<i64: 32, 16>}, {pipeline_mode = #tpu.pipeline_mode<synchronous>, transform_indices = @transform_1, window_bounds = array<i64: 8, 32>}, {pipeline_mode = #tpu.pipeline_mode<synchronous>, transform_indices = @transform_2, window_bounds = array<i64: 8, 32>}, {pipeline_mode = #tpu.pipeline_mode<synchronous>, transform_indices = @transform_3, window_bounds = array<i64: 16, 128>}, {pipeline_mode = #tpu.pipeline_mode<synchronous>, transform_indices = @transform_4, window_bounds = array<i64: 32, 128>}, {pipeline_mode = #tpu.pipeline_mode<synchronous>, transform_indices = @transform_5, window_bounds = array<i64: 1, 128>}, {pipeline_mode = #tpu.pipeline_mode<synchronous>, transform_indices = @transform_6, window_bounds = array<i64: 32, 32>}, {pipeline_mode = #tpu.pipeline_mode<synchronous>, transform_indices = @transform_7, window_bounds = array<i64: 1, 32>}, {pipeline_mode = #tpu.pipeline_mode<synchronous>, transform_indices = @transform_8, window_bounds = array<i64: 32, 128>}, {pipeline_mode = #tpu.pipeline_mode<synchronous>, transform_indices = @transform_9, window_bounds = array<i64: 1, 128>}, {pipeline_mode = #tpu.pipeline_mode<synchronous>, transform_indices = @transform_10, window_bounds = array<i64: 8, 384>}]} {
    %c0_i32 = arith.constant 0 : i32
    %0 = arith.cmpi eq, %arg0, %c0_i32 : i32
    %1 = arith.extui %0 : i1 to i32
    %c0_i32_0 = arith.constant 0 : i32
    %2 = arith.cmpi ne, %1, %c0_i32_0 : i32
    scf.if %2 {
      %c0_36 = arith.constant 0 : index
      %c0_37 = arith.constant 0 : index
      %102 = vector.load %arg2[%c0_36, %c0_37] : memref<8x32xf32, #tpu.memory_space<vmem>>, vector<8x32xf32>
      %c0_38 = arith.constant 0 : index
      %c0_39 = arith.constant 0 : index
      %103 = vector.load %arg13[%c0_38, %c0_39] : memref<8x32xf32, #tpu.memory_space<vmem>>, vector<8x32xf32>
      tpu.vector_store %arg13[%c0_38, %c0_39], %102 {strides = array<i32>} : memref<8x32xf32, #tpu.memory_space<vmem>>, vector<8x32xf32>,
      %c0_40 = arith.constant 0 : index
      %c0_41 = arith.constant 0 : index
      %104 = vector.load %arg3[%c0_40, %c0_41] : memref<8x32xf32, #tpu.memory_space<vmem>>, vector<8x32xf32>
      %c0_42 = arith.constant 0 : index
      %c0_43 = arith.constant 0 : index
      %105 = vector.load %arg14[%c0_42, %c0_43] : memref<8x32xf32, #tpu.memory_space<vmem>>, vector<8x32xf32>
      tpu.vector_store %arg14[%c0_42, %c0_43], %104 {strides = array<i32>} : memref<8x32xf32, #tpu.memory_space<vmem>>, vector<8x32xf32>,
    } else {
    }
    %c0 = arith.constant 0 : index
    %c0_1 = arith.constant 0 : index
    %3 = vector.load %arg1[%c0, %c0_1] : memref<32x16xf32, #tpu.memory_space<vmem>>, vector<32x16xf32>
    %c0_2 = arith.constant 0 : index
    %c0_3 = arith.constant 0 : index
    %4 = vector.load %arg4[%c0_2, %c0_3] : memref<16x128xf32, #tpu.memory_space<vmem>>, vector<16x128xf32>
    %cst = arith.constant dense<0.000000e+00> : vector<32x128xf32>
    %5 = tpu.matmul %3, %4, %cst {dimension_numbers = #tpu.dot_dimension_numbers<[1], [0], [0], [1], [0, 0, 1, 1], [], []>} : vector<32x16xf32>, vector<16x128xf32>, vector<32x128xf32> -> vector<32x128xf32>
    %c0_4 = arith.constant 0 : index
    %c0_5 = arith.constant 0 : index
    %6 = vector.load %arg6[%c0_4, %c0_5] : memref<1x128xf32, #tpu.memory_space<vmem>>, vector<1x128xf32>
    %7 = vector.broadcast %6 : vector<1x128xf32> to vector<32x128xf32>
    %8 = arith.addf %5, %7 : vector<32x128xf32>
    %c0_6 = arith.constant 0 : index
    %c0_7 = arith.constant 0 : index
    %9 = vector.load %arg12[%c0_6, %c0_7] : memref<32x128xf32, #tpu.memory_space<vmem>>, vector<32x128xf32>
    tpu.vector_store %arg12[%c0_6, %c0_7], %8 {strides = array<i32>} : memref<32x128xf32, #tpu.memory_space<vmem>>, vector<32x128xf32>,
    %c0_8 = arith.constant 0 : index
    %c0_9 = arith.constant 0 : index
    %10 = vector.load %arg5[%c0_8, %c0_9] : memref<32x128xf32, #tpu.memory_space<vmem>>, vector<32x128xf32>
    %c0_10 = arith.constant 0 : index
    %c0_11 = arith.constant 0 : index
    %11 = vector.load %arg13[%c0_10, %c0_11] : memref<8x32xf32, #tpu.memory_space<vmem>>, vector<8x32xf32>
    %c0_12 = arith.constant 0 : index
    %c0_13 = arith.constant 0 : index
    %12 = vector.load %arg14[%c0_12, %c0_13] : memref<8x32xf32, #tpu.memory_space<vmem>>, vector<8x32xf32>
    %c0_i32_14 = arith.constant 0 : i32
    %c8_i32 = arith.constant 8 : i32
    %13 = arith.muli %c0_i32_14, %c8_i32 : i32
    %14 = tpu.assume_multiple %13, 8 : i32
    %15 = arith.index_cast %14 : i32 to index
    %c0_15 = arith.constant 0 : index
    %16 = vector.load %arg12[%15, %c0_15] : memref<32x128xf32, #tpu.memory_space<vmem>>, vector<8x128xf32>
    %cst_16 = arith.constant dense<0.000000e+00> : vector<8x128xf32>
    %17 = tpu.matmul %11, %10, %cst_16 {dimension_numbers = #tpu.dot_dimension_numbers<[1], [0], [0], [1], [0, 0, 1, 1], [], []>} : vector<8x32xf32>, vector<32x128xf32>, vector<8x128xf32> -> vector<8x128xf32>
    %18 = arith.addf %16, %17 : vector<8x128xf32>
    %19 = arith.negf %18 : vector<8x128xf32>
    %20 = math.exp %19 : vector<8x128xf32>
    %cst_17 = arith.constant 1.000000e+00 : f32
    %21 = vector.broadcast %cst_17 : f32 to vector<8x128xf32>
    %22 = arith.addf %21, %20 : vector<8x128xf32>
    %23 = arith.divf %21, %22 : vector<8x128xf32>
    %24 = math.tanh %18 : vector<8x128xf32>
    %25 = vector.extract_strided_slice %23 {offsets = [0, 0], sizes = [8, 32], strides = [1, 1]} : vector<8x128xf32> to vector<8x32xf32>
    %26 = vector.extract_strided_slice %23 {offsets = [0, 32], sizes = [8, 32], strides = [1, 1]} : vector<8x128xf32> to vector<8x32xf32>
    %27 = vector.extract_strided_slice %24 {offsets = [0, 64], sizes = [8, 32], strides = [1, 1]} : vector<8x128xf32> to vector<8x32xf32>
    %28 = vector.extract_strided_slice %23 {offsets = [0, 96], sizes = [8, 32], strides = [1, 1]} : vector<8x128xf32> to vector<8x32xf32>
    %29 = arith.mulf %26, %12 : vector<8x32xf32>
    %30 = arith.mulf %25, %27 : vector<8x32xf32>
    %31 = arith.addf %29, %30 : vector<8x32xf32>
    %32 = math.tanh %31 : vector<8x32xf32>
    %33 = arith.mulf %28, %32 : vector<8x32xf32>
    %c1_i32 = arith.constant 1 : i32
    %c8_i32_18 = arith.constant 8 : i32
    %34 = arith.muli %c1_i32, %c8_i32_18 : i32
    %35 = tpu.assume_multiple %34, 8 : i32
    %36 = arith.index_cast %35 : i32 to index
    %c0_19 = arith.constant 0 : index
    %37 = vector.load %arg12[%36, %c0_19] : memref<32x128xf32, #tpu.memory_space<vmem>>, vector<8x128xf32>
    %cst_20 = arith.constant dense<0.000000e+00> : vector<8x128xf32>
    %38 = tpu.matmul %33, %10, %cst_20 {dimension_numbers = #tpu.dot_dimension_numbers<[1], [0], [0], [1], [0, 0, 1, 1], [], []>} : vector<8x32xf32>, vector<32x128xf32>, vector<8x128xf32> -> vector<8x128xf32>
    %39 = arith.addf %37, %38 : vector<8x128xf32>
    %40 = arith.negf %39 : vector<8x128xf32>
    %41 = math.exp %40 : vector<8x128xf32>
    %cst_21 = arith.constant 1.000000e+00 : f32
    %42 = vector.broadcast %cst_21 : f32 to vector<8x128xf32>
    %43 = arith.addf %42, %41 : vector<8x128xf32>
    %44 = arith.divf %42, %43 : vector<8x128xf32>
    %45 = math.tanh %39 : vector<8x128xf32>
    %46 = vector.extract_strided_slice %44 {offsets = [0, 0], sizes = [8, 32], strides = [1, 1]} : vector<8x128xf32> to vector<8x32xf32>
    %47 = vector.extract_strided_slice %44 {offsets = [0, 32], sizes = [8, 32], strides = [1, 1]} : vector<8x128xf32> to vector<8x32xf32>
    %48 = vector.extract_strided_slice %45 {offsets = [0, 64], sizes = [8, 32], strides = [1, 1]} : vector<8x128xf32> to vector<8x32xf32>
    %49 = vector.extract_strided_slice %44 {offsets = [0, 96], sizes = [8, 32], strides = [1, 1]} : vector<8x128xf32> to vector<8x32xf32>
    %50 = arith.mulf %47, %31 : vector<8x32xf32>
    %51 = arith.mulf %46, %48 : vector<8x32xf32>
    %52 = arith.addf %50, %51 : vector<8x32xf32>
    %53 = math.tanh %52 : vector<8x32xf32>
    %54 = arith.mulf %49, %53 : vector<8x32xf32>
    %c2_i32 = arith.constant 2 : i32
    %c8_i32_22 = arith.constant 8 : i32
    %55 = arith.muli %c2_i32, %c8_i32_22 : i32
    %56 = tpu.assume_multiple %55, 8 : i32
    %57 = arith.index_cast %56 : i32 to index
    %c0_23 = arith.constant 0 : index
    %58 = vector.load %arg12[%57, %c0_23] : memref<32x128xf32, #tpu.memory_space<vmem>>, vector<8x128xf32>
    %cst_24 = arith.constant dense<0.000000e+00> : vector<8x128xf32>
    %59 = tpu.matmul %54, %10, %cst_24 {dimension_numbers = #tpu.dot_dimension_numbers<[1], [0], [0], [1], [0, 0, 1, 1], [], []>} : vector<8x32xf32>, vector<32x128xf32>, vector<8x128xf32> -> vector<8x128xf32>
    %60 = arith.addf %58, %59 : vector<8x128xf32>
    %61 = arith.negf %60 : vector<8x128xf32>
    %62 = math.exp %61 : vector<8x128xf32>
    %cst_25 = arith.constant 1.000000e+00 : f32
    %63 = vector.broadcast %cst_25 : f32 to vector<8x128xf32>
    %64 = arith.addf %63, %62 : vector<8x128xf32>
    %65 = arith.divf %63, %64 : vector<8x128xf32>
    %66 = math.tanh %60 : vector<8x128xf32>
    %67 = vector.extract_strided_slice %65 {offsets = [0, 0], sizes = [8, 32], strides = [1, 1]} : vector<8x128xf32> to vector<8x32xf32>
    %68 = vector.extract_strided_slice %65 {offsets = [0, 32], sizes = [8, 32], strides = [1, 1]} : vector<8x128xf32> to vector<8x32xf32>
    %69 = vector.extract_strided_slice %66 {offsets = [0, 64], sizes = [8, 32], strides = [1, 1]} : vector<8x128xf32> to vector<8x32xf32>
    %70 = vector.extract_strided_slice %65 {offsets = [0, 96], sizes = [8, 32], strides = [1, 1]} : vector<8x128xf32> to vector<8x32xf32>
    %71 = arith.mulf %68, %52 : vector<8x32xf32>
    %72 = arith.mulf %67, %69 : vector<8x32xf32>
    %73 = arith.addf %71, %72 : vector<8x32xf32>
    %74 = math.tanh %73 : vector<8x32xf32>
    %75 = arith.mulf %70, %74 : vector<8x32xf32>
    %c3_i32 = arith.constant 3 : i32
    %c8_i32_26 = arith.constant 8 : i32
    %76 = arith.muli %c3_i32, %c8_i32_26 : i32
    %77 = tpu.assume_multiple %76, 8 : i32
    %78 = arith.index_cast %77 : i32 to index
    %c0_27 = arith.constant 0 : index
    %79 = vector.load %arg12[%78, %c0_27] : memref<32x128xf32, #tpu.memory_space<vmem>>, vector<8x128xf32>
    %cst_28 = arith.constant dense<0.000000e+00> : vector<8x128xf32>
    %80 = tpu.matmul %75, %10, %cst_28 {dimension_numbers = #tpu.dot_dimension_numbers<[1], [0], [0], [1], [0, 0, 1, 1], [], []>} : vector<8x32xf32>, vector<32x128xf32>, vector<8x128xf32> -> vector<8x128xf32>
    %81 = arith.addf %79, %80 : vector<8x128xf32>
    %82 = arith.negf %81 : vector<8x128xf32>
    %83 = math.exp %82 : vector<8x128xf32>
    %cst_29 = arith.constant 1.000000e+00 : f32
    %84 = vector.broadcast %cst_29 : f32 to vector<8x128xf32>
    %85 = arith.addf %84, %83 : vector<8x128xf32>
    %86 = arith.divf %84, %85 : vector<8x128xf32>
    %87 = math.tanh %81 : vector<8x128xf32>
    %88 = vector.extract_strided_slice %86 {offsets = [0, 0], sizes = [8, 32], strides = [1, 1]} : vector<8x128xf32> to vector<8x32xf32>
    %89 = vector.extract_strided_slice %86 {offsets = [0, 32], sizes = [8, 32], strides = [1, 1]} : vector<8x128xf32> to vector<8x32xf32>
    %90 = vector.extract_strided_slice %87 {offsets = [0, 64], sizes = [8, 32], strides = [1, 1]} : vector<8x128xf32> to vector<8x32xf32>
    %91 = vector.extract_strided_slice %86 {offsets = [0, 96], sizes = [8, 32], strides = [1, 1]} : vector<8x128xf32> to vector<8x32xf32>
    %92 = arith.mulf %89, %73 : vector<8x32xf32>
    %93 = arith.mulf %88, %90 : vector<8x32xf32>
    %94 = arith.addf %92, %93 : vector<8x32xf32>
    %95 = math.tanh %94 : vector<8x32xf32>
    %96 = arith.mulf %91, %95 : vector<8x32xf32>
    %c4_i32 = arith.constant 4 : i32
    %c0_30 = arith.constant 0 : index
    %c0_31 = arith.constant 0 : index
    %97 = vector.load %arg13[%c0_30, %c0_31] : memref<8x32xf32, #tpu.memory_space<vmem>>, vector<8x32xf32>
    tpu.vector_store %arg13[%c0_30, %c0_31], %96 {strides = array<i32>} : memref<8x32xf32, #tpu.memory_space<vmem>>, vector<8x32xf32>,
    %c0_32 = arith.constant 0 : index
    %c0_33 = arith.constant 0 : index
    %98 = vector.load %arg14[%c0_32, %c0_33] : memref<8x32xf32, #tpu.memory_space<vmem>>, vector<8x32xf32>
    tpu.vector_store %arg14[%c0_32, %c0_33], %94 {strides = array<i32>} : memref<8x32xf32, #tpu.memory_space<vmem>>, vector<8x32xf32>,
    %c1_i32_34 = arith.constant 1 : i32
    %99 = arith.cmpi eq, %arg0, %c1_i32_34 : i32
    %100 = arith.extui %99 : i1 to i32
    %c0_i32_35 = arith.constant 0 : i32
    %101 = arith.cmpi ne, %100, %c0_i32_35 : i32
    scf.if %101 {
      %c0_36 = arith.constant 0 : index
      %c0_37 = arith.constant 0 : index
      %102 = vector.load %arg7[%c0_36, %c0_37] : memref<32x32xf32, #tpu.memory_space<vmem>>, vector<32x32xf32>
      %cst_38 = arith.constant dense<0.000000e+00> : vector<8x32xf32>
      %103 = tpu.matmul %96, %102, %cst_38 {dimension_numbers = #tpu.dot_dimension_numbers<[1], [0], [0], [1], [0, 0, 1, 1], [], []>} : vector<8x32xf32>, vector<32x32xf32>, vector<8x32xf32> -> vector<8x32xf32>
      %c0_39 = arith.constant 0 : index
      %c0_40 = arith.constant 0 : index
      %104 = vector.load %arg8[%c0_39, %c0_40] : memref<1x32xf32, #tpu.memory_space<vmem>>, vector<1x32xf32>
      %105 = vector.broadcast %104 : vector<1x32xf32> to vector<8x32xf32>
      %106 = arith.addf %103, %105 : vector<8x32xf32>
      %cst_41 = arith.constant 0.000000e+00 : f32
      %107 = vector.broadcast %cst_41 : f32 to vector<8x32xf32>
      %108 = arith.maximumf %106, %107 : vector<8x32xf32>
      %c0_42 = arith.constant 0 : index
      %c0_43 = arith.constant 0 : index
      %109 = vector.load %arg9[%c0_42, %c0_43] : memref<32x128xf32, #tpu.memory_space<vmem>>, vector<32x128xf32>
      %cst_44 = arith.constant dense<0.000000e+00> : vector<8x128xf32>
      %110 = tpu.matmul %108, %109, %cst_44 {dimension_numbers = #tpu.dot_dimension_numbers<[1], [0], [0], [1], [0, 0, 1, 1], [], []>} : vector<8x32xf32>, vector<32x128xf32>, vector<8x128xf32> -> vector<8x128xf32>
      %c0_45 = arith.constant 0 : index
      %c0_46 = arith.constant 0 : index
      %111 = vector.load %arg10[%c0_45, %c0_46] : memref<1x128xf32, #tpu.memory_space<vmem>>, vector<1x128xf32>
      %112 = vector.broadcast %111 : vector<1x128xf32> to vector<8x128xf32>
      %113 = arith.addf %110, %112 : vector<8x128xf32>
      %cst_47 = arith.constant 0.000000e+00 : f32
      %114 = vector.broadcast %cst_47 : f32 to vector<8x96xf32>
      %115 = tpu.concatenate %96, %114 in 1 : vector<8x32xf32>, vector<8x96xf32> -> vector<8x128xf32>
      %cst_48 = arith.constant 0.000000e+00 : f32
      %116 = vector.broadcast %cst_48 : f32 to vector<8x96xf32>
      %117 = tpu.concatenate %94, %116 in 1 : vector<8x32xf32>, vector<8x96xf32> -> vector<8x128xf32>
      %118 = tpu.concatenate %113, %115, %117 in 1 : vector<8x128xf32>, vector<8x128xf32>, vector<8x128xf32> -> vector<8x384xf32>
      %c0_49 = arith.constant 0 : index
      %c0_50 = arith.constant 0 : index
      %119 = vector.load %arg11[%c0_49, %c0_50] : memref<8x384xf32, #tpu.memory_space<vmem>>, vector<8x384xf32>
      tpu.vector_store %arg11[%c0_49, %c0_50], %118 {strides = array<i32>} : memref<8x384xf32, #tpu.memory_space<vmem>>, vector<8x384xf32>,
    } else {
    }
    return
  }
  func.func @transform_0(%arg0: i32) -> (i32, i32) {
    %c0_i32 = arith.constant 0 : i32
    %c0_i32_0 = arith.constant 0 : i32
    return %arg0, %c0_i32 : i32, i32
  }
  func.func @transform_1(%arg0: i32) -> (i32, i32) {
    %c0_i32 = arith.constant 0 : i32
    %c0_i32_0 = arith.constant 0 : i32
    %c0_i32_1 = arith.constant 0 : i32
    return %c0_i32, %c0_i32_0 : i32, i32
  }
  func.func @transform_2(%arg0: i32) -> (i32, i32) {
    %c0_i32 = arith.constant 0 : i32
    %c0_i32_0 = arith.constant 0 : i32
    %c0_i32_1 = arith.constant 0 : i32
    return %c0_i32, %c0_i32_0 : i32, i32
  }
  func.func @transform_3(%arg0: i32) -> (i32, i32) {
    %c0_i32 = arith.constant 0 : i32
    %c0_i32_0 = arith.constant 0 : i32
    %c0_i32_1 = arith.constant 0 : i32
    return %c0_i32, %c0_i32_0 : i32, i32
  }
  func.func @transform_4(%arg0: i32) -> (i32, i32) {
    %c0_i32 = arith.constant 0 : i32
    %c0_i32_0 = arith.constant 0 : i32
    %c0_i32_1 = arith.constant 0 : i32
    return %c0_i32, %c0_i32_0 : i32, i32
  }
  func.func @transform_5(%arg0: i32) -> (i32, i32) {
    %c0_i32 = arith.constant 0 : i32
    %c0_i32_0 = arith.constant 0 : i32
    %c0_i32_1 = arith.constant 0 : i32
    return %c0_i32, %c0_i32_0 : i32, i32
  }
  func.func @transform_6(%arg0: i32) -> (i32, i32) {
    %c0_i32 = arith.constant 0 : i32
    %c0_i32_0 = arith.constant 0 : i32
    %c0_i32_1 = arith.constant 0 : i32
    return %c0_i32, %c0_i32_0 : i32, i32
  }
  func.func @transform_7(%arg0: i32) -> (i32, i32) {
    %c0_i32 = arith.constant 0 : i32
    %c0_i32_0 = arith.constant 0 : i32
    %c0_i32_1 = arith.constant 0 : i32
    return %c0_i32, %c0_i32_0 : i32, i32
  }
  func.func @transform_8(%arg0: i32) -> (i32, i32) {
    %c0_i32 = arith.constant 0 : i32
    %c0_i32_0 = arith.constant 0 : i32
    %c0_i32_1 = arith.constant 0 : i32
    return %c0_i32, %c0_i32_0 : i32, i32
  }
  func.func @transform_9(%arg0: i32) -> (i32, i32) {
    %c0_i32 = arith.constant 0 : i32
    %c0_i32_0 = arith.constant 0 : i32
    %c0_i32_1 = arith.constant 0 : i32
    return %c0_i32, %c0_i32_0 : i32, i32
  }
  func.func @transform_10(%arg0: i32) -> (i32, i32) {
    %c0_i32 = arith.constant 0 : i32
    %c0_i32_0 = arith.constant 0 : i32
    %c0_i32_1 = arith.constant 0 : i32
    return %c0_i32, %c0_i32_0 : i32, i32
  }
}

</mosaic_0001>

<bundles_post_ra>
// kernel: tpu_custom_call.1
= control target key start
LH: loop header
LB: loop body
LE: loop exit
PB: predicated region body
PF: predicated region fallthrough
CT: control target
= control target key end

     0   :  { %15 = vsyncpa [#allocation6], 0  ;;  %s1919_s0 = inlined_call_operand.vmem [shape: f32[64,16], index: 0, kind: input, shape index: {}]   ;;  %s1920_s1 = inlined_call_operand.hbm [shape: f32[8,32], index: 1, kind: input, shape index: {}]   ;;  %s1921_s2 = inlined_call_operand.hbm [shape: f32[8,32], index: 2, kind: input, shape index: {}]   ;;  %s1922_s3 = inlined_call_operand.hbm [shape: f32[16,128], index: 3, kind: input, shape index: {}]   ;;  %s1923_s4 = inlined_call_operand.vmem [shape: f32[32,128], index: 4, kind: input, shape index: {}]   ;;  %s1924_s5 = inlined_call_operand.vmem [shape: f32[1,128], index: 5, kind: input, shape index: {}]   ;;  %s1925_s6 = inlined_call_operand.vmem [shape: f32[32,32], index: 6, kind: input, shape index: {}]   ;;  %s1926_s7 = inlined_call_operand.vmem [shape: f32[1,32], index: 7, kind: input, shape index: {}]   ;;  %s1927_s8 = inlined_call_operand.vmem [shape: f32[32,128], index: 8, kind: input, shape index: {}]   ;;  %s1928_s9 = inlined_call_operand.vmem [shape: f32[1,128], index: 9, kind: input, shape index: {}]   ;;  %s1929_s10 = inlined_call_operand.hbm [shape: f32[8,384], index: 10, kind: output, shape index: {}]  }
   0x1   :  { %16 = vsyncpa [#allocation9], 0 }
   0x2   :  { %17 = vsyncpa [#allocation7], 0  ;;  %s1668_s13 = smov 0  }
   0x3 LB: > { %s1674_s14 = sadd.s32 4294967295, %s1596_s13   ;;  %p1193_p0 = scmp.ge.s32.totalorder %s1596_s13, 1  ;;  %s1596_s13 = sphi %s1668_s13, %s23_s13  }
   0x4   : > { %p264_p1 = scmp.lt.s32.totalorder %s1596_s13, 3  ;;  %p1930_p3 = scmp.eq.s32.totalorder %s1674_s14, 0 }
   0x5   : > { %s1598_s15 = smov [#allocation8]   ;;  %s1599_s18 = smov [#allocation5]  }
   0x6   : > { %s288_s16 = sshll.u32 %s1598_s15, 4  ;;  %p1680_p4 = pnand %p1193_p0, %p264_p1  ;;  %s289_s16 = int_to_ptr.vmem [resolvable:$true] %s288_s16 }
   0x7   : > { %s277_s19 = sshll.u32 %s1599_s18, 4  ;;  %s1600_s20 = smov [#allocation10]   ;;  %s1692_s19 = int_to_ptr.vmem [resolvable:$true] %s277_s19 }
   0x8   : > { %s1932_s17 = scalar_select %p1680_p4, 1, 0 }
   0x9   : > { %p1395_p5 = pneg %p1680_p4  ;;  %s298_s21 = sshll.u32 %s1600_s20, 4  ;;  %s1694_s21 = int_to_ptr.vmem [resolvable:$true] %s298_s21 }
   0xa   : > { %s1468_s25 = scalar_lea.hbm %s1921_s2, 128 }
   0xb   : > { %p1688_p6 = pnand %p1930_p3, %p1395_p5  ;;  %p1469_p7 = scmp.ne.s32.totalorder %s1921_s2, %s1468_s25 }
   0xc   : > { %p1475_p11 = scmp.lt.u32.totalorder %s1468_s25, %s1921_s2 }
   0xd   : > { %p1704_p8 = pneg %p1688_p6 }
   0xf   : > { %p1471_p9 = pnand %p1704_p8, %p1469_p7 }
  0x11   : > { %p1472_p10 = pneg %p1471_p9 }
  0x13   : > { %p1477_p12 = pnand %p1475_p11, %p1472_p10 }
  0x15   : > { %1480 = shalt.err (!%p1477_p12)
}
  0x16   : > { %s1481_s11 = scalar_lea.vmem %s289_s16, 128  ;;  %p1489_p5 = scmp.lt.s32.totalorder %s289_s16, %s289_s16 }
  0x17   : > { %p1482_p13 = scmp.ne.s32.totalorder %s289_s16, %s1481_s11  ;;  %p1490_p2 = scmp.lt.s32.totalorder %s1481_s11, %s1481_s11 }
  0x19   : > { %p1484_p0 = pnand %p1482_p13, %p1704_p8  ;;  %p1491_p3 = por %p1490_p2, %p1489_p5 }
  0x1b   : > { %p1485_p1 = pneg %p1484_p0 }
  0x1d   : > { %p1492_p4 = pnand %p1491_p3, %p1485_p1 }
  0x1f   : > { %1495 = shalt.err (!%p1492_p4)
}
  0x20   : > { %1401 = dma.hbm_to_vmem [thread:$0]  (!%p1688_p6), %s1921_s2, 128, %s289_s16, [#allocation9]  }
  0x21   : > { %s1496_s23 = scalar_lea.hbm %s1920_s1, 128 }
  0x22   : > { %p1497_p7 = scmp.ne.s32.totalorder %s1920_s1, %s1496_s23  ;;  %p1503_p3 = scmp.lt.u32.totalorder %s1496_s23, %s1920_s1 }
  0x24   : > { %p1499_p9 = pnand %p1497_p7, %p1704_p8 }
  0x26   : > { %p1500_p2 = pneg %p1499_p9 }
  0x28   : > { %p1505_p4 = pnand %p1503_p3, %p1500_p2 }
  0x2a   : > { %1508 = shalt.err (!%p1505_p4)
}
  0x2b   : > { %s1509_s16 = scalar_lea.vmem %s1692_s19, 128  ;;  %p1517_p13 = scmp.lt.s32.totalorder %s1692_s19, %s1692_s19 }
  0x2c   : > { %p1510_p10 = scmp.ne.s32.totalorder %s1692_s19, %s1509_s16  ;;  %p1518_p0 = scmp.lt.s32.totalorder %s1509_s16, %s1509_s16 }
  0x2e   : > { %p1512_p11 = pnand %p1510_p10, %p1704_p8  ;;  %p1519_p1 = por %p1518_p0, %p1517_p13 }
  0x30   : > { %p1513_p12 = pneg %p1512_p11 }
  0x32   : > { %p1520_p5 = pnand %p1519_p1, %p1513_p12 }
  0x34   : > { %1523 = shalt.err (!%p1520_p5)
}
  0x35   : > { %1398 = dma.hbm_to_vmem [thread:$0]  (!%p1688_p6), %s1920_s1, 128, %s1692_s19, [#allocation6]  }
  0x36   : > { %s1524_s15 = scalar_lea.hbm %s1922_s3, 256 }
  0x37   : > { %p1525_p7 = scmp.ne.s32.totalorder %s1922_s3, %s1524_s15  ;;  %p1531_p3 = scmp.lt.u32.totalorder %s1524_s15, %s1922_s3 }
  0x39   : > { %p1527_p9 = pnand %p1525_p7, %p1704_p8 }
  0x3b   : > { %p1528_p2 = pneg %p1527_p9 }
  0x3d   : > { %p1533_p4 = pnand %p1531_p3, %p1528_p2 }
  0x3f   : > { %1536 = shalt.err (!%p1533_p4)
}
  0x40   : > { %s1537_s19 = scalar_lea.vmem %s1694_s21, 256  ;;  %p1545_p13 = scmp.lt.s32.totalorder %s1694_s21, %s1694_s21 }
  0x41   : > { %p1538_p10 = scmp.ne.s32.totalorder %s1694_s21, %s1537_s19  ;;  %p1546_p0 = scmp.lt.s32.totalorder %s1537_s19, %s1537_s19 }
  0x43   : > { %p1540_p11 = pnand %p1538_p10, %p1704_p8  ;;  %p1547_p1 = por %p1546_p0, %p1545_p13 }
  0x45   : > { %p1541_p12 = pneg %p1540_p11 }
  0x47   : > { %p1548_p5 = pnand %p1547_p1, %p1541_p12 }
  0x49   : > { %1551 = shalt.err (!%p1548_p5)
}
  0x4a   : > { %s1601_s25 = smov 128   ;;  %s1602_s26 = smov 8  }
  0x4b   : > { %1404 = dma.hbm_to_vmem [thread:$0]  (!%p1688_p6), %s1922_s3, 256, %s1694_s21, [#allocation9], %s1601_s25, %s1601_s25, %s1602_s26  }
  0x4c   : > { %p1935_p7 = scmp.ne.s32.totalorder %s1932_s17, 0 }
  0x4d   : > { %p1936_p8 = scmp.eq.s32.totalorder (!%p1935_p7), %s1674_s14, 0 }
  0x4e   : > { %341 = sbr.rel (%p1935_p7) target bundleno = 3373 (0xd2d), region = 60 }
  0x55   : > { %1583 = dma.done.wait (%p1936_p8), [#allocation6], 128   ;;  %p1937_p9 = pmov %p1936_p8 }
  0x56   : > { %p1938_p2 = pmov %p1936_p8 }
  0x57   : > { %1585 = vsyncadd (%p1937_p9), [#allocation6], 4294967168 }
  0x58   : > { %1587 = dma.done.wait (%p1938_p2), [#allocation9], 384   ;;  %p1939_p3 = pmov %p1938_p2 }
  0x59   : > { %s1202_s22 = sshll.u32 %s1674_s14, 2  ;;  %p1940_p6 = scmp.ne.s32.totalorder %s1674_s14, 0 }
  0x5a   : > { %1589 = vsyncadd (%p1939_p3), [#allocation9], 4294966912  ;;  %p383_p4 = scmp.lt.s32.totalorder %s1202_s22, 7  ;;  %v392_v0 = vld [vmem:[#allocation5] sm:$0xff] (!%p1940_p6)  ;;  %vm393_vm0 = vcmask (!%p1940_p6), 261120   ;;  %v395_v1 = vld [vmem:[#allocation8] sm:$0xff] (!%p1940_p6) }
  0x5b   : > { %391 = sbr.rel (%p1940_p6) target bundleno = 98 (0x62), region = 76  ;;  %394 = vst.msk [vmem:[#allocation3] sm:$0xff] (!%p1940_p6), %vm393_vm0, %v392_v0  ;;  %396 = vst.msk [vmem:[#allocation4] sm:$0xff] (!%p1940_p6), %vm393_vm0, %v395_v1 }
  0x5c   : > { %s1942_s22 = smov (!%p383_p4, %s1202_s22), 7 }
  0x5d   : > { %s1203_s21 = sshll.u32 %s1942_s22, 3 }
  0x5e   : > { %s1780_s29 = scalar_lea.vmem %s1919_s0, %s1203_s21 }
  0x62 PF: > { %v401_v2 = vld [vmem:[#allocation10] sm:$0xff]  ;;  %v402_v3 = vld [vmem:[#allocation10 + $0x8] sm:$0xff]  ;;  %vm410_vm1 = vcmask 130048   ;;  %v1603_v5 = vmov 0.0|0.0   ;;  %v514_v10 = vld [vmem:[%s1923_s4 + $0x10] sm:$0xff]  ;;  %vm1604_vm2 = vmmov 0  }
  0x63   : > { %v512_v4 = vld [vmem:[%s1923_s4] sm:$0xff]  ;;  %1343 = vmatprep.subr.bf16.mxu1 %v1603_v5  ;;  %v1339_v6 = vpack.c.bf16 %v402_v3, %v401_v2  ;;  %v513_v7 = vld [vmem:[%s1923_s4 + $0x8] sm:$0xff]  ;;  %v515_v11 = vld [vmem:[%s1923_s4 + $0x18] sm:$0xff]  ;;  %v1605_v12 = vmov 0.0   ;;  %vm519_vm3 = vcmask 261120   ;;  %s1606_s26 = smov 64  }
  0x64   : > { %v397_v8 = vld [vmem:[%s1780_s29] sm:$0xff]  ;;  %v1792_v9 = vpack.c.bf16 %v513_v7, %v512_v4  ;;  %1281 = vmatprep.mubr.msk.f32.mxu1 %vm1604_vm2, %v1605_v12  ;;  %v398_v13 = vld [vmem:[%s1780_s29 + $0x8] sm:$0xff]  ;;  %v1347_v14 = vpack.c.bf16 %v515_v11, %v514_v10  ;;  %s1607_s27 = smov 32   ;;  %v399_v35 = vld [vmem:[%s1780_s29 + $0x10] sm:$0xff]  ;;  %s1608_s16 = smov 96  }
  0x65   : > { %1267 = vmatprep.mubr.msk.f32.mxu0 %vm410_vm1, %v397_v8  ;;  %1340 = vmatprep.subr.bf16.mxu0 %v1339_v6  ;;  %v516_v15 = vld [vmem:[#allocation3] sm:$0xff]  ;;  %v517_v24 = vld [vmem:[#allocation4] sm:$0xff]  ;;  %v400_v36 = vld [vmem:[%s1780_s29 + $0x18] sm:$0xff]  ;;  %p1218_p10 = scmp.ne.s32.totalorder %s1674_s14, 1 }
  0x66   : > { %1345 = vmatpush3.bf16.msra.mxu1 %v1792_v9  ;;  %1342 = vmatpush3.bf16.msra.mxu0 %v1339_v6  ;;  %v1820_v16 = vld [vmem:[%s1924_s5] ss:$0 sm:$0xff]  ;;  %vm1610_vm4 = vmmov (!%p1218_p10), 0  }
  0x67   : > { %1346 = vmatprep.subr.bf16.mxu1 %v1603_v5  ;;  %1349 = vmatprep.subr.bf16.mxu0 %v1603_v5 }
  0x69   : > { %1268 = vmatmul.mubr.msk.f32.vlgmr.msra.gmra.mrb[0].mxu0 %vm410_vm1, %v398_v13 }
  0x6a   : > { %1348 = vmatpush3.bf16.msra.mxu1 %v1347_v14  ;;  %1351 = vmatpush3.bf16.msra.mxu0 %v1792_v9 }
  0x6b   : > { %1352 = vmatprep.subr.bf16.mxu0 %v1603_v5  ;;  %1355 = vmatprep.subr.bf16.mxu1 %v1603_v5 }
  0x6c   : > { %1270 = vmatprep.mubr.msk.f32.mxu0 %vm410_vm1, %v399_v35  ;;  %v943_v35 = vld [vmem:[%s1925_s6 + $0x8] sm:$0xff] (!%p1218_p10) }
  0x6d   : > { %1282 = vmatmul.mubr.msk.f32.vlgmr.msra.gmra.mrb[0].mxu1 %vm519_vm3, %v516_v15  ;;  %1271 = vmatmul.mubr.msk.f32.gmra.mrb[2].mxu0 %vm410_vm1, %v400_v36  ;;  %v944_v36 = vld [vmem:[%s1925_s6 + $0x10] sm:$0xff] (!%p1218_p10) }
  0x6e   : > { %1354 = vmatpush3.bf16.msra.mxu0 %v1347_v14  ;;  %1357 = vmatpush3.bf16.msra.mxu1 %v1792_v9 }
  0x6f   : > { %1358 = vmatprep.subr.bf16.mxu1 %v1603_v5  ;;  %1303 = vmatprep.mubr.msk.f32.mxu1 %vm1604_vm2, %v1605_v12 }
  0x70   : > { %1361 = vmatprep.subr.bf16.mxu0 %v1603_v5  ;;  %1292 = vmatprep.mubr.msk.f32.mxu0 %vm1604_vm2, %v1605_v12 }
  0x72   : > { %1360 = vmatpush3.bf16.msra.mxu1 %v1347_v14 }
 0x13c   : > { %v1269_v17 = vpop.f32.mrb[0].mxu0 }
 0x13d   : > { %v489_v18 = vpop.f32.mrb[1].mxu0  ;;  %v495_v43 = vadd.f32 %v1269_v17, %v1820_v16 }
 0x13e   : > { %v490_v19 = vadd.f32 %v1820_v16, %v489_v18 }
 0x140   : > { %v589_v20 = vpop.f32.mrb[0].mxu1  ;;  %v1272_v40 = vpop.f32.mrb[2].mxu0 }
 0x141   : > { %v593_v21 = vadd.f32 %v589_v20, %v490_v19  ;;  %v1283_v22 = vpop.f32.mrb[1].mxu1  ;;  %v499_v41 = vpop.f32.mrb[3].mxu0  ;;  %v505_v15 = vadd.f32 %v1272_v40, %v1820_v16  ;;  %v1611_v40 = vmov (!%p1218_p10), 0.0  }
 0x142   : > { %v500_v61 = vadd.f32 %v1820_v16, %v499_v41  ;;  %v1026_v41 = vld [vmem:[%s1927_s8] sm:$0xff] (!%p1218_p10) }
 0x143   : > { %1436 = vtanh.f32 %v593_v21  ;;  %v1211_v25 = vmul.f32 -1.442695, %v593_v21 }
 0x145   : > { %1438 = vpow2.f32 %v1211_v25 }
 0x14d   : > { %v1437_v23 = vpop.eup %1436 }
 0x14e   : > { %607 = vrot.lane.b32.xlu0 %v1437_v23, %s1606_s26 }
 0x14f   : > { %v1439_v26 = vpop.eup %1438 }
 0x150   : > { %v597_v27 = vadd.f32 1.0, %v1439_v26 }
 0x152   : > { %602 = vrot.lane.b32.xlu0 %v517_v24, %s1607_s27  ;;  %1440 = vrcp.f32 %v597_v27 }
 0x15c   : > { %v1441_v28 = vpop.eup %1440 }
 0x1c0   : > { %v608_v29 = vpop.permute.xlu0 %607 }
 0x1c1   : > { %v610_v30 = vmul.f32 %v1441_v28, %v608_v29 }
 0x1c3   : > { %612 = vrot.lane.b32.xlu1 %v610_v30, %s1607_s27 }
 0x1c4   : > { %v603_v31 = vpop.permute.xlu0 %602 }
 0x1c5   : > { %v605_v32 = vmul.f32 %v1441_v28, %v603_v31 }
 0x235   : > { %v613_v33 = vpop.permute.xlu1 %612 }
 0x236   : > { %v615_v34 = vadd.f32 %v613_v33, %v605_v32 }
 0x238   : > { %1442 = vtanh.f32 %v615_v34 }
 0x242   : > { %v1443_v37 = vpop.eup %1442 }
 0x243   : > { %618 = vrot.lane.b32.xlu1 %v1443_v37, %s1606_s26  ;;  %v1609_v37 = vmov (!%p1218_p10), 0.0|0.0  }
 0x244   : > { %1373 = vmatprep.subr.bf16.mxu1 (!%p1218_p10), %v1609_v37 }
 0x2b5   : > { %v619_v38 = vpop.permute.xlu1 %618 }
 0x2b6   : > { %v621_v39 = vmul.f32 %v1441_v28, %v619_v38 }
 0x2b8   : > { %625 = vrot.lane.b32.xlu0 %v621_v39, %s1607_s27  ;;  %v945_v39 = vld [vmem:[%s1925_s6 + $0x18] sm:$0xff] (!%p1218_p10) }
 0x32a   : > { %v626_v42 = vpop.permute.xlu0 %625 }
 0x32b   : > { %1293 = vmatmul.mubr.msk.f32.vlgmr.msra.gmra.mrb[4].mxu0 %vm519_vm3, %v626_v42  ;;  %v1027_v42 = vld [vmem:[%s1927_s8 + $0x8] sm:$0xff] (!%p1218_p10) }
 0x32c   : > { %1363 = vmatpush3.bf16.msra.mxu0 %v1792_v9  ;;  %1314 = vmatprep.mubr.msk.f32.mxu0 %vm1604_vm2, %v1605_v12 }
 0x32d   : > { %1364 = vmatprep.subr.bf16.mxu0 %v1603_v5 }
 0x330   : > { %1366 = vmatpush3.bf16.msra.mxu0 %v1347_v14 }
 0x331   : > { %1367 = vmatprep.subr.bf16.mxu0 (!%p1218_p10), %v1609_v37 }
 0x3fe   : > { %v695_v44 = vpop.f32.mrb[4].mxu0 }
 0x3ff   : > { %v699_v45 = vadd.f32 %v695_v44, %v495_v43  ;;  %v1294_v46 = vpop.f32.mrb[5].mxu0  ;;  %v1374_v43 = vpack.c.bf16 (!%p1218_p10), %v1027_v42, %v1026_v41  ;;  %v1371_v44 = vpack.c.bf16 (!%p1218_p10), %v945_v39, %v944_v36 }
 0x400   : > { %v1029_v46 = vld [vmem:[%s1927_s8 + $0x18] sm:$0xff] (!%p1218_p10) }
 0x401   : > { %1444 = vtanh.f32 %v699_v45  ;;  %v1213_v48 = vmul.f32 -1.442695, %v699_v45  ;;  %v1028_v45 = vld [vmem:[%s1927_s8 + $0x10] sm:$0xff] (!%p1218_p10) }
 0x403   : > { %1446 = vpow2.f32 %v1213_v48  ;;  %v1219_v48 = vld [vmem:[%s1926_s7] ss:$0 sm:$0xff] (!%p1218_p10) }
 0x40b   : > { %v1445_v47 = vpop.eup %1444 }
 0x40c   : > { %709 = vrot.lane.b32.xlu1 %v1445_v47, %s1606_s26  ;;  %v1377_v47 = vpack.c.bf16 (!%p1218_p10), %v1029_v46, %v1028_v45 }
 0x40d   : > { %v1447_v49 = vpop.eup %1446 }
 0x40e   : > { %v703_v50 = vadd.f32 1.0, %v1447_v49 }
 0x410   : > { %1448 = vrcp.f32 %v703_v50 }
 0x41a   : > { %v1449_v51 = vpop.eup %1448 }
 0x41b   : > { %v707_v54 = vmul.f32 %v1449_v51, %v615_v34  ;;  %v942_v34 = vld [vmem:[%s1925_s6] sm:$0xff] (!%p1218_p10) }
 0x41c   : > { %v1368_v38 = vpack.c.bf16 (!%p1218_p10), %v943_v35, %v942_v34 }
 0x47e   : > { %v710_v52 = vpop.permute.xlu1 %709 }
 0x47f   : > { %v712_v53 = vmul.f32 %v1449_v51, %v710_v52 }
 0x481   : > { %714 = vrot.lane.b32.xlu0 %v712_v53, %s1607_s27 }
 0x4f3   : > { %v715_v55 = vpop.permute.xlu0 %714 }
 0x4f4   : > { %v717_v56 = vadd.f32 %v715_v55, %v707_v54  ;;  %v1221_v55 = vld [vmem:[%s1928_s9] ss:$0 sm:$0xff] (!%p1218_p10) }
 0x4f6   : > { %1450 = vtanh.f32 %v717_v56 }
 0x500   : > { %v1451_v57 = vpop.eup %1450 }
 0x501   : > { %720 = vrot.lane.b32.xlu1 %v1451_v57, %s1606_s26 }
 0x573   : > { %v721_v58 = vpop.permute.xlu1 %720 }
 0x574   : > { %v723_v59 = vmul.f32 %v1449_v51, %v721_v58 }
 0x576   : > { %727 = vrot.lane.b32.xlu0 %v723_v59, %s1607_s27 }
 0x5e8   : > { %v728_v60 = vpop.permute.xlu0 %727 }
 0x5e9   : > { %1304 = vmatmul.mubr.msk.f32.vlgmr.msra.gmra.mrb[2].mxu1 %vm519_vm3, %v728_v60 }
 0x5ea   : > { %1336 = vmatprep.mubr.msk.f32.mxu1 (!%p1218_p10), %vm1610_vm4, %v1611_v40  ;;  %1375 = vmatpush3.bf16.msra.mxu1 (!%p1218_p10), %v1374_v43 }
 0x5eb   : > { %1376 = vmatprep.subr.bf16.mxu1 (!%p1218_p10), %v1609_v37 }
 0x5ee   : > { %1378 = vmatpush3.bf16.msra.mxu1 (!%p1218_p10), %v1377_v47 }
 0x6bc   : > { %v797_v62 = vpop.f32.mrb[2].mxu1 }
 0x6bd   : > { %v801_v63 = vadd.f32 %v797_v62, %v500_v61  ;;  %v1305_v0 = vpop.f32.mrb[3].mxu1 }
 0x6bf   : > { %1452 = vtanh.f32 %v801_v63  ;;  %v1215_v2 = vmul.f32 -1.442695, %v801_v63 }
 0x6c1   : > { %1454 = vpow2.f32 %v1215_v2 }
 0x6c9   : > { %v1453_v1 = vpop.eup %1452 }
 0x6ca   : > { %811 = vrot.lane.b32.xlu1 %v1453_v1, %s1606_s26 }
 0x6cb   : > { %v1455_v3 = vpop.eup %1454 }
 0x6cc   : > { %v805_v4 = vadd.f32 1.0, %v1455_v3 }
 0x6ce   : > { %1456 = vrcp.f32 %v805_v4 }
 0x6d8   : > { %v1457_v5 = vpop.eup %1456 }
 0x6d9   : > { %v809_v8 = vmul.f32 %v1457_v5, %v717_v56 }
 0x73c   : > { %v812_v6 = vpop.permute.xlu1 %811 }
 0x73d   : > { %v814_v7 = vmul.f32 %v1457_v5, %v812_v6 }
 0x73f   : > { %816 = vrot.lane.b32.xlu0 %v814_v7, %s1607_s27 }
 0x7b1   : > { %v817_v9 = vpop.permute.xlu0 %816 }
 0x7b2   : > { %v819_v10 = vadd.f32 %v817_v9, %v809_v8 }
 0x7b4   : > { %1458 = vtanh.f32 %v819_v10 }
 0x7be   : > { %v1459_v11 = vpop.eup %1458 }
 0x7bf   : > { %822 = vrot.lane.b32.xlu1 %v1459_v11, %s1606_s26 }
 0x831   : > { %v823_v12 = vpop.permute.xlu1 %822 }
 0x832   : > { %v825_v13 = vmul.f32 %v1457_v5, %v823_v12 }
 0x834   : > { %829 = vrot.lane.b32.xlu0 %v825_v13, %s1607_s27 }
 0x8a6   : > { %v830_v14 = vpop.permute.xlu0 %829 }
 0x8a7   : > { %1315 = vmatmul.mubr.msk.f32.vlgmr.msra.gmra.mrb[6].mxu0 %vm519_vm3, %v830_v14 }
 0x8a8   : > { %1325 = vmatprep.mubr.msk.f32.mxu0 (!%p1218_p10), %vm1610_vm4, %v1611_v40  ;;  %1369 = vmatpush3.bf16.msra.mxu0 (!%p1218_p10), %v1368_v38 }
 0x8a9   : > { %1370 = vmatprep.subr.bf16.mxu0 (!%p1218_p10), %v1609_v37 }
 0x8ac   : > { %1372 = vmatpush3.bf16.msra.mxu0 (!%p1218_p10), %v1371_v44 }
 0x97a   : > { %v899_v17 = vpop.f32.mrb[6].mxu0 }
 0x97b   : > { %v903_v18 = vadd.f32 %v899_v17, %v505_v15  ;;  %v1316_v19 = vpop.f32.mrb[7].mxu0 }
 0x97d   : > { %1460 = vtanh.f32 %v903_v18  ;;  %v1217_v21 = vmul.f32 -1.442695, %v903_v18 }
 0x97f   : > { %1462 = vpow2.f32 %v1217_v21 }
 0x987   : > { %v1461_v20 = vpop.eup %1460 }
 0x988   : > { %913 = vrot.lane.b32.xlu1 %v1461_v20, %s1606_s26 }
 0x989   : > { %v1463_v22 = vpop.eup %1462 }
 0x98a   : > { %v907_v23 = vadd.f32 1.0, %v1463_v22 }
 0x98c   : > { %1464 = vrcp.f32 %v907_v23 }
 0x996   : > { %v1465_v24 = vpop.eup %1464 }
 0x997   : > { %v911_v27 = vmul.f32 %v1465_v24, %v819_v10 }
 0x9fa   : > { %v914_v25 = vpop.permute.xlu1 %913 }
 0x9fb   : > { %v916_v26 = vmul.f32 %v1465_v24, %v914_v25 }
 0x9fd   : > { %918 = vrot.lane.b32.xlu0 %v916_v26, %s1607_s27 }
 0xa6f   : > { %v919_v28 = vpop.permute.xlu0 %918 }
 0xa70   : > { %v921_v16 = vadd.f32 %v919_v28, %v911_v27 }
 0xa72   : > { %1466 = vtanh.f32 %v921_v16 }
 0xa7c   : > { %v1467_v29 = vpop.eup %1466 }
 0xa7d   : > { %924 = vrot.lane.b32.xlu1 %v1467_v29, %s1606_s26 }
 0xa81   : > { %934 = vrot.lane.b32.xlu1 %v921_v16, %s1608_s16 }
 0xaef   : > { %v925_v30 = vpop.permute.xlu1 %924 }
 0xaf0   : > { %v927_v31 = vmul.f32 %v1465_v24, %v925_v30 }
 0xaf2   : > { %929 = vrot.lane.b32.xlu0 %v927_v31, %s1607_s27 }
 0xaf3   : > { %v935_v32 = vpop.permute.xlu1 %934 }
 0xaf4   : > { %937 = vst.msk [vmem:[#allocation4] sm:$0xff] %vm519_vm3, %v935_v32  ;;  %v1111_v54 = vsel (!%p1218_p10), %vm519_vm3, %v935_v32, 0.0 }
 0xaf5   : > { %1114 = vst [vmem:[#allocation11 + $0x10] sm:$0xff] (!%p1218_p10), %v1111_v54 }
 0xb5f   : > { %941 = sbr.rel (%p1218_p10) target bundleno = 3348 (0xd14), region = 80 }
 0xb64   : > { %v930_v33 = vpop.permute.xlu0 %929 }
 0xb65   : > { %932 = vst.msk [vmem:[#allocation3] sm:$0xff] %vm519_vm3, %v930_v33  ;;  %1326 = vmatmul.mubr.msk.f32.vlgmr.msra.gmra.mrb[0].mxu0 (!%p1218_p10), %vm519_vm3, %v930_v33  ;;  %v1110_v53 = vsel (!%p1218_p10), %vm519_vm3, %v930_v33, 0.0 }
 0xb66   : > { %1113 = vst [vmem:[#allocation11 + $0x8] sm:$0xff] %v1110_v53 }
 0xc38   : > { %v1021_v49 = vpop.f32.mrb[0].mxu0 }
 0xc39   : > { %v1022_v50 = vadd.f32 %v1219_v48, %v1021_v49  ;;  %v1327_v51 = vpop.f32.mrb[1].mxu0 }
 0xc3b   : > { %v1025_v52 = vmax.f32 %v1022_v50, 0.0 }
 0xc3d   : > { %1337 = vmatmul.mubr.msk.f32.vlgmr.msra.gmra.mrb[0].mxu1 %vm519_vm3, %v1025_v52 }
 0xd10   : > { %v1106_v56 = vpop.f32.mrb[0].mxu1 }
 0xd11   : > { %v1107_v57 = vadd.f32 %v1221_v55, %v1106_v56  ;;  %v1338_v58 = vpop.f32.mrb[1].mxu1 }
 0xd13   : > { %1112 = vst [vmem:[#allocation11] sm:$0xff] %v1107_v57 }
 0xd14 PF: > { %p1411_p11 = scmp.eq.s32.totalorder %s1674_s14, 1  ;;  %s1612_s28 = smov [#allocation11]  }
 0xd15   : > { %s1122_s17 = sshll.u32 %s1612_s28, 4  ;;  %s1123_s17 = int_to_ptr.vmem [resolvable:$true] %s1122_s17 }
 0xd16   : > { %s1552_s29 = scalar_lea.vmem %s1123_s17, 384  ;;  %p1559_p1 = scmp.lt.s32.totalorder %s1123_s17, %s1123_s17 }
 0xd17   : > { %p1553_p12 = scmp.ne.s32.totalorder %s1123_s17, %s1552_s29  ;;  %p1560_p5 = scmp.lt.s32.totalorder %s1552_s29, %s1552_s29 }
 0xd19   : > { %p1554_p13 = pnand %p1553_p12, %p1411_p11  ;;  %p1561_p7 = por %p1560_p5, %p1559_p1 }
 0xd1b   : > { %p1555_p0 = pneg %p1554_p13 }
 0xd1d   : > { %p1562_p8 = pnand %p1561_p7, %p1555_p0 }
 0xd1f   : > { %1565 = shalt.err (!%p1562_p8)
}
 0xd20   : > { %s1566_s12 = scalar_lea.hbm %s1929_s10, 384 }
 0xd21   : > { %p1567_p9 = scmp.ne.s32.totalorder %s1929_s10, %s1566_s12  ;;  %p1572_p4 = scmp.lt.u32.totalorder %s1566_s12, %s1929_s10 }
 0xd23   : > { %p1568_p2 = pnand %p1567_p9, %p1411_p11 }
 0xd25   : > { %p1569_p3 = pneg %p1568_p2 }
 0xd27   : > { %p1574_p6 = pnand %p1572_p4, %p1569_p3 }
 0xd29   : > { %1577 = shalt.err (!%p1574_p6)
}
 0xd2a   : > { %1392 = dma.vmem_to_hbm [thread:$0]  (%p1411_p11), %s1123_s17, 384, %s1929_s10, [#allocation7]  }
 0xd2b   : > { %1591 = dma.done.wait (%p1411_p11), [#allocation7], 384  }
 0xd2c   : > { %1593 = vsyncadd (%p1411_p11), [#allocation7], 4294966912 }
 0xd2d PF: > { %s23_s13 = sadd.s32 1, %s1596_s13  }
 0xd2e   : > { %p20_p10 = scmp.ge.s32.totalorder %s23_s13, 4  }
 0xd30   :  { %22 = sbr.rel (!%p20_p10) target bundleno = 3 (0x3), region = 111 }
 0xd37   :  { %1135 = vsyncpa [#allocation6], 1 }
 0xd38   :  { %1137 = vsyncpa [#allocation6 + $0x1], 1 }
 0xd39   :  { %1138 = vsyncpa [#allocation9], 1 }
 0xd3a   :  { %1139 = vsyncpa [#allocation7], 1 }
 0xd3b   :  { %1141 = vsyncpa [#allocation7 + $0x1], 1 }

</bundles_post_ra>
